<compile_context>
chip_gen: v7x
topology: tpu7x:2x2x1
jax: 0.10.0
libtpu: 0.0.40
codegen_flags: <defaults>
</compile_context>

<pallas_src>
import jax
import jax.numpy as jnp
from jax.experimental import pallas as pl
from jax.experimental.pallas import tpu as pltpu


HIDDEN = 256


def _mlp_kernel(x_ref, c_ref,
                w0x_ref, w0c_ref, b0_ref,
                w1x_ref, w1c_ref, b1_ref,
                w2x_ref, w2c_ref, b2_ref,
                w3x_ref, w3c_ref, b3_ref,
                o_ref):
    # Streamed activations (bf16).
    x = x_ref[...]          # [tile, state_dim]
    c = c_ref[...]          # [tile, emb_dim]

    # layer 0: Linear(state_dim + emb_dim, 256) + ReLU
    h = (jnp.dot(x, w0x_ref[...], preferred_element_type=jnp.float32)
         + jnp.dot(c, w0c_ref[...], preferred_element_type=jnp.float32)
         + b0_ref[...])
    h = jnp.maximum(h, 0.0).astype(jnp.bfloat16)

    # layer 1: Linear(256 + emb_dim, 256) + ReLU
    h = (jnp.dot(h, w1x_ref[...], preferred_element_type=jnp.float32)
         + jnp.dot(c, w1c_ref[...], preferred_element_type=jnp.float32)
         + b1_ref[...])
    h = jnp.maximum(h, 0.0).astype(jnp.bfloat16)

    # layer 2: Linear(256 + emb_dim, 256) + ReLU
    h = (jnp.dot(h, w2x_ref[...], preferred_element_type=jnp.float32)
         + jnp.dot(c, w2c_ref[...], preferred_element_type=jnp.float32)
         + b2_ref[...])
    h = jnp.maximum(h, 0.0).astype(jnp.bfloat16)

    # layer 3: Linear(256 + emb_dim, state_dim) -- w3/b3 are lane-padded to a
    # multiple of 128; slice the real columns before the (compact) store.
    out = (jnp.dot(h, w3x_ref[...], preferred_element_type=jnp.float32)
           + jnp.dot(c, w3c_ref[...], preferred_element_type=jnp.float32)
           + b3_ref[...])
    o_ref[...] = out[:, : o_ref.shape[-1]].astype(o_ref.dtype)


def _pick_batch_tile(B, cap=2048):
    """Largest tile <= cap dividing B, preferring multiples of 16 (bf16 sublane
    packing).  B <= cap -> single grid step (best on single-TC v5e/v6e; on v7x
    large batches still split into >= 2 'parallel' steps for the 2 TCs)."""
    if B <= cap:
        return B
    for mod in (16, 8, 1):
        for t in range(cap, 0, -1):
            if B % t == 0 and t % mod == 0:
                return t
    return B


def di_diffusion_mlp(x, conditioning, params, *, batch_tile=None):
    """Fused forward pass. x: [B, state_dim], conditioning: [B, emb_dim]."""
    B, state_dim = x.shape
    emb_dim = conditioning.shape[-1]
    (w0x, w0c, b0, w1x, w1c, b1, w2x, w2c, b2, w3x, w3c, b3) = params

    if batch_tile is None:
        batch_tile = _pick_batch_tile(B)
    assert B % batch_tile == 0
    grid = (B // batch_tile,)

    # Lane-pad only the final-layer weights (in-kernel MXU convenience);
    # the padded columns are exactly zero and are sliced off before the store.
    n3 = max(128, ((state_dim + 127) // 128) * 128)

    # Streamed activations in bf16 (halves the dominant input stream).
    x_bf = x.astype(jnp.bfloat16)
    c_bf = conditioning.astype(jnp.bfloat16)

    bf = lambda w: w.astype(jnp.bfloat16)
    w3x_p = jnp.pad(w3x, ((0, 0), (0, n3 - state_dim))).astype(jnp.bfloat16)
    w3c_p = jnp.pad(w3c, ((0, 0), (0, n3 - state_dim))).astype(jnp.bfloat16)
    b3_p = jnp.pad(b3, ((0, 0), (0, n3 - state_dim))).astype(jnp.float32)

    weights = (bf(w0x), bf(w0c), b0.astype(jnp.float32),
               bf(w1x), bf(w1c), b1.astype(jnp.float32),
               bf(w2x), bf(w2c), b2.astype(jnp.float32),
               w3x_p, w3c_p, b3_p)

    def batched(feat):
        return pl.BlockSpec((batch_tile, feat), lambda i: (i, 0))

    def resident(a):
        # Constant index_map -> DMA'd once, stays resident in VMEM.
        return pl.BlockSpec(a.shape, lambda i: (0, 0))

    in_specs = ([batched(state_dim), batched(emb_dim)]
                + [resident(w) for w in weights])
    out_specs = pl.BlockSpec((batch_tile, state_dim), lambda i: (i, 0))

    out = pl.pallas_call(
        _mlp_kernel,
        out_shape=jax.ShapeDtypeStruct((B, state_dim), x.dtype),
        grid_spec=pltpu.PrefetchScalarGridSpec(
            num_scalar_prefetch=0,
            grid=grid,
            in_specs=in_specs,
            out_specs=out_specs,
        ),
        compiler_params=pltpu.CompilerParams(
            dimension_semantics=("parallel",),
        ),
    )(x_bf, c_bf, *weights)

    return out


def init_params(key, time_emb_dim, state_dim, cond_emb_dim):
    """Deterministic init matching nn.Linear shapes (uniform +/- 1/sqrt(fan_in)).

    Each PyTorch Linear weight of shape (out, in) is stored here transposed and
    split along the input axis into (x-part, cond-part)."""
    emb_dim = time_emb_dim + cond_emb_dim
    dims = [
        (state_dim + emb_dim, HIDDEN),
        (HIDDEN + emb_dim, HIDDEN),
        (HIDDEN + emb_dim, HIDDEN),
        (HIDDEN + emb_dim, state_dim),
    ]
    params = []
    keys = jax.random.split(key, len(dims) * 2)
    for li, (fan_in, fan_out) in enumerate(dims):
        bound = 1.0 / jnp.sqrt(fan_in)
        w = jax.random.uniform(keys[2 * li], (fan_in, fan_out),
                               minval=-bound, maxval=bound, dtype=jnp.float32)
        b = jax.random.uniform(keys[2 * li + 1], (1, fan_out),
                               minval=-bound, maxval=bound, dtype=jnp.float32)
        x_dim = fan_in - emb_dim
        params.extend([w[:x_dim, :], w[x_dim:, :], b])
    return tuple(params)


def reference_forward(x, conditioning, params):
    """Pure-JAX f32 reference matching the PyTorch module semantics."""
    (w0x, w0c, b0, w1x, w1c, b1, w2x, w2c, b2, w3x, w3c, b3) = params

    def lin(h, wx, wc, b):
        cat = jnp.concatenate([h, conditioning], axis=-1)
        w = jnp.concatenate([wx, wc], axis=0)
        return cat @ w + b

    h = jax.nn.relu(lin(x, w0x, w0c, b0))
    h = jax.nn.relu(lin(h, w1x, w1c, b1))
    h = jax.nn.relu(lin(h, w2x, w2c, b2))
    return lin(h, w3x, w3c, b3)


if __name__ == "__main__":
    time_emb_dim = 16
    cond_emb_dim = 16
    state_dim = 8
    batch = 64          # -> batch_tile = 64, grid = (1,)

    key = jax.random.PRNGKey(0)
    kx, kc, kp = jax.random.split(key, 3)

    x = jax.random.normal(kx, (batch, state_dim), dtype=jnp.float32)
    conditioning = jax.random.normal(
        kc, (batch, time_emb_dim + cond_emb_dim), dtype=jnp.float32)

    params = init_params(kp, time_emb_dim, state_dim, cond_emb_dim)

    out = di_diffusion_mlp(x, conditioning, params)
    out = jax.block_until_ready(out)

    ref = reference_forward(x, conditioning, params)
    assert out.shape == (batch, state_dim)
    # bf16 MXU inputs / bf16 streamed activations with f32 accumulation
    # -> loosened tolerance vs the f32 reference (deliberate precision scheme).
    assert jnp.allclose(out, ref, atol=5e-2, rtol=5e-2), (
        float(jnp.max(jnp.abs(out - ref))))

    print("KERNEL_OK")
</pallas_src>

<mosaic_0001>
module attributes {stable_mosaic.version = 11 : i64} {
  func.func @_mlp_kernel(%arg0: i32, %arg1: memref<64x8xbf16, #tpu.memory_space<vmem>>, %arg2: memref<64x32xbf16, #tpu.memory_space<vmem>>, %arg3: memref<8x256xbf16, #tpu.memory_space<vmem>>, %arg4: memref<32x256xbf16, #tpu.memory_space<vmem>>, %arg5: memref<1x256xf32, #tpu.memory_space<vmem>>, %arg6: memref<256x256xbf16, #tpu.memory_space<vmem>>, %arg7: memref<32x256xbf16, #tpu.memory_space<vmem>>, %arg8: memref<1x256xf32, #tpu.memory_space<vmem>>, %arg9: memref<256x256xbf16, #tpu.memory_space<vmem>>, %arg10: memref<32x256xbf16, #tpu.memory_space<vmem>>, %arg11: memref<1x256xf32, #tpu.memory_space<vmem>>, %arg12: memref<256x128xbf16, #tpu.memory_space<vmem>>, %arg13: memref<32x128xbf16, #tpu.memory_space<vmem>>, %arg14: memref<1x128xf32, #tpu.memory_space<vmem>>, %arg15: memref<64x8xf32, #tpu.memory_space<vmem>>) attributes {dimension_semantics = [#tpu.dimension_semantics<parallel>], iteration_bounds = array<i64: 1>, scalar_prefetch = 0 : i64, scratch_operands = 0 : i64, tpu.core_type = #tpu.core_type<tc>, window_params = [{transform_indices = @transform_0, window_bounds = array<i64: 64, 8>}, {transform_indices = @transform_1, window_bounds = array<i64: 64, 32>}, {pipeline_mode = #tpu.pipeline_mode<synchronous>, transform_indices = @transform_2, window_bounds = array<i64: 8, 256>}, {pipeline_mode = #tpu.pipeline_mode<synchronous>, transform_indices = @transform_3, window_bounds = array<i64: 32, 256>}, {pipeline_mode = #tpu.pipeline_mode<synchronous>, transform_indices = @transform_4, window_bounds = array<i64: 1, 256>}, {pipeline_mode = #tpu.pipeline_mode<synchronous>, transform_indices = @transform_5, window_bounds = array<i64: 256, 256>}, {pipeline_mode = #tpu.pipeline_mode<synchronous>, transform_indices = @transform_6, window_bounds = array<i64: 32, 256>}, {pipeline_mode = #tpu.pipeline_mode<synchronous>, transform_indices = @transform_7, window_bounds = array<i64: 1, 256>}, {pipeline_mode = #tpu.pipeline_mode<synchronous>, transform_indices = @transform_8, window_bounds = array<i64: 256, 256>}, {pipeline_mode = #tpu.pipeline_mode<synchronous>, transform_indices = @transform_9, window_bounds = array<i64: 32, 256>}, {pipeline_mode = #tpu.pipeline_mode<synchronous>, transform_indices = @transform_10, window_bounds = array<i64: 1, 256>}, {pipeline_mode = #tpu.pipeline_mode<synchronous>, transform_indices = @transform_11, window_bounds = array<i64: 256, 128>}, {pipeline_mode = #tpu.pipeline_mode<synchronous>, transform_indices = @transform_12, window_bounds = array<i64: 32, 128>}, {pipeline_mode = #tpu.pipeline_mode<synchronous>, transform_indices = @transform_13, window_bounds = array<i64: 1, 128>}, {transform_indices = @transform_14, window_bounds = array<i64: 64, 8>}]} {
    %c0 = arith.constant 0 : index
    %c0_0 = arith.constant 0 : index
    %0 = vector.load %arg1[%c0, %c0_0] : memref<64x8xbf16, #tpu.memory_space<vmem>>, vector<64x8xbf16>
    %c0_1 = arith.constant 0 : index
    %c0_2 = arith.constant 0 : index
    %1 = vector.load %arg2[%c0_1, %c0_2] : memref<64x32xbf16, #tpu.memory_space<vmem>>, vector<64x32xbf16>
    %c0_3 = arith.constant 0 : index
    %c0_4 = arith.constant 0 : index
    %2 = vector.load %arg3[%c0_3, %c0_4] : memref<8x256xbf16, #tpu.memory_space<vmem>>, vector<8x256xbf16>
    %cst = arith.constant dense<0.000000e+00> : vector<64x256xf32>
    %3 = tpu.matmul %0, %2, %cst {dimension_numbers = #tpu.dot_dimension_numbers<[1], [0], [0], [1], [0, 0, 1, 1], [], []>} : vector<64x8xbf16>, vector<8x256xbf16>, vector<64x256xf32> -> vector<64x256xf32>
    %c0_5 = arith.constant 0 : index
    %c0_6 = arith.constant 0 : index
    %4 = vector.load %arg4[%c0_5, %c0_6] : memref<32x256xbf16, #tpu.memory_space<vmem>>, vector<32x256xbf16>
    %cst_7 = arith.constant dense<0.000000e+00> : vector<64x256xf32>
    %5 = tpu.matmul %1, %4, %cst_7 {dimension_numbers = #tpu.dot_dimension_numbers<[1], [0], [0], [1], [0, 0, 1, 1], [], []>} : vector<64x32xbf16>, vector<32x256xbf16>, vector<64x256xf32> -> vector<64x256xf32>
    %6 = arith.addf %3, %5 : vector<64x256xf32>
    %c0_8 = arith.constant 0 : index
    %c0_9 = arith.constant 0 : index
    %7 = vector.load %arg5[%c0_8, %c0_9] : memref<1x256xf32, #tpu.memory_space<vmem>>, vector<1x256xf32>
    %8 = vector.broadcast %7 : vector<1x256xf32> to vector<64x256xf32>
    %9 = arith.addf %6, %8 : vector<64x256xf32>
    %cst_10 = arith.constant 0.000000e+00 : f32
    %10 = vector.broadcast %cst_10 : f32 to vector<64x256xf32>
    %11 = arith.maximumf %9, %10 : vector<64x256xf32>
    %12 = arith.truncf %11 : vector<64x256xf32> to vector<64x256xbf16>
    %c0_11 = arith.constant 0 : index
    %c0_12 = arith.constant 0 : index
    %13 = vector.load %arg6[%c0_11, %c0_12] : memref<256x256xbf16, #tpu.memory_space<vmem>>, vector<256x256xbf16>
    %cst_13 = arith.constant dense<0.000000e+00> : vector<64x256xf32>
    %14 = tpu.matmul %12, %13, %cst_13 {dimension_numbers = #tpu.dot_dimension_numbers<[1], [0], [0], [1], [0, 0, 1, 1], [], []>} : vector<64x256xbf16>, vector<256x256xbf16>, vector<64x256xf32> -> vector<64x256xf32>
    %c0_14 = arith.constant 0 : index
    %c0_15 = arith.constant 0 : index
    %15 = vector.load %arg7[%c0_14, %c0_15] : memref<32x256xbf16, #tpu.memory_space<vmem>>, vector<32x256xbf16>
    %cst_16 = arith.constant dense<0.000000e+00> : vector<64x256xf32>
    %16 = tpu.matmul %1, %15, %cst_16 {dimension_numbers = #tpu.dot_dimension_numbers<[1], [0], [0], [1], [0, 0, 1, 1], [], []>} : vector<64x32xbf16>, vector<32x256xbf16>, vector<64x256xf32> -> vector<64x256xf32>
    %17 = arith.addf %14, %16 : vector<64x256xf32>
    %c0_17 = arith.constant 0 : index
    %c0_18 = arith.constant 0 : index
    %18 = vector.load %arg8[%c0_17, %c0_18] : memref<1x256xf32, #tpu.memory_space<vmem>>, vector<1x256xf32>
    %19 = vector.broadcast %18 : vector<1x256xf32> to vector<64x256xf32>
    %20 = arith.addf %17, %19 : vector<64x256xf32>
    %cst_19 = arith.constant 0.000000e+00 : f32
    %21 = vector.broadcast %cst_19 : f32 to vector<64x256xf32>
    %22 = arith.maximumf %20, %21 : vector<64x256xf32>
    %23 = arith.truncf %22 : vector<64x256xf32> to vector<64x256xbf16>
    %c0_20 = arith.constant 0 : index
    %c0_21 = arith.constant 0 : index
    %24 = vector.load %arg9[%c0_20, %c0_21] : memref<256x256xbf16, #tpu.memory_space<vmem>>, vector<256x256xbf16>
    %cst_22 = arith.constant dense<0.000000e+00> : vector<64x256xf32>
    %25 = tpu.matmul %23, %24, %cst_22 {dimension_numbers = #tpu.dot_dimension_numbers<[1], [0], [0], [1], [0, 0, 1, 1], [], []>} : vector<64x256xbf16>, vector<256x256xbf16>, vector<64x256xf32> -> vector<64x256xf32>
    %c0_23 = arith.constant 0 : index
    %c0_24 = arith.constant 0 : index
    %26 = vector.load %arg10[%c0_23, %c0_24] : memref<32x256xbf16, #tpu.memory_space<vmem>>, vector<32x256xbf16>
    %cst_25 = arith.constant dense<0.000000e+00> : vector<64x256xf32>
    %27 = tpu.matmul %1, %26, %cst_25 {dimension_numbers = #tpu.dot_dimension_numbers<[1], [0], [0], [1], [0, 0, 1, 1], [], []>} : vector<64x32xbf16>, vector<32x256xbf16>, vector<64x256xf32> -> vector<64x256xf32>
    %28 = arith.addf %25, %27 : vector<64x256xf32>
    %c0_26 = arith.constant 0 : index
    %c0_27 = arith.constant 0 : index
    %29 = vector.load %arg11[%c0_26, %c0_27] : memref<1x256xf32, #tpu.memory_space<vmem>>, vector<1x256xf32>
    %30 = vector.broadcast %29 : vector<1x256xf32> to vector<64x256xf32>
    %31 = arith.addf %28, %30 : vector<64x256xf32>
    %cst_28 = arith.constant 0.000000e+00 : f32
    %32 = vector.broadcast %cst_28 : f32 to vector<64x256xf32>
    %33 = arith.maximumf %31, %32 : vector<64x256xf32>
    %34 = arith.truncf %33 : vector<64x256xf32> to vector<64x256xbf16>
    %c0_29 = arith.constant 0 : index
    %c0_30 = arith.constant 0 : index
    %35 = vector.load %arg12[%c0_29, %c0_30] : memref<256x128xbf16, #tpu.memory_space<vmem>>, vector<256x128xbf16>
    %cst_31 = arith.constant dense<0.000000e+00> : vector<64x128xf32>
    %36 = tpu.matmul %34, %35, %cst_31 {dimension_numbers = #tpu.dot_dimension_numbers<[1], [0], [0], [1], [0, 0, 1, 1], [], []>} : vector<64x256xbf16>, vector<256x128xbf16>, vector<64x128xf32> -> vector<64x128xf32>
    %c0_32 = arith.constant 0 : index
    %c0_33 = arith.constant 0 : index
    %37 = vector.load %arg13[%c0_32, %c0_33] : memref<32x128xbf16, #tpu.memory_space<vmem>>, vector<32x128xbf16>
    %cst_34 = arith.constant dense<0.000000e+00> : vector<64x128xf32>
    %38 = tpu.matmul %1, %37, %cst_34 {dimension_numbers = #tpu.dot_dimension_numbers<[1], [0], [0], [1], [0, 0, 1, 1], [], []>} : vector<64x32xbf16>, vector<32x128xbf16>, vector<64x128xf32> -> vector<64x128xf32>
    %39 = arith.addf %36, %38 : vector<64x128xf32>
    %c0_35 = arith.constant 0 : index
    %c0_36 = arith.constant 0 : index
    %40 = vector.load %arg14[%c0_35, %c0_36] : memref<1x128xf32, #tpu.memory_space<vmem>>, vector<1x128xf32>
    %41 = vector.broadcast %40 : vector<1x128xf32> to vector<64x128xf32>
    %42 = arith.addf %39, %41 : vector<64x128xf32>
    %43 = vector.extract_strided_slice %42 {offsets = [0, 0], sizes = [64, 8], strides = [1, 1]} : vector<64x128xf32> to vector<64x8xf32>
    %c0_37 = arith.constant 0 : index
    %c0_38 = arith.constant 0 : index
    %44 = vector.load %arg15[%c0_37, %c0_38] : memref<64x8xf32, #tpu.memory_space<vmem>>, vector<64x8xf32>
    tpu.vector_store %arg15[%c0_37, %c0_38], %43 {strides = array<i32>} : memref<64x8xf32, #tpu.memory_space<vmem>>, vector<64x8xf32>,
    return
  }
  func.func @transform_0(%arg0: i32) -> (i32, i32) {
    %c0_i32 = arith.constant 0 : i32
    %c0_i32_0 = arith.constant 0 : i32
    return %arg0, %c0_i32 : i32, i32
  }
  func.func @transform_1(%arg0: i32) -> (i32, i32) {
    %c0_i32 = arith.constant 0 : i32
    %c0_i32_0 = arith.constant 0 : i32
    return %arg0, %c0_i32 : i32, i32
  }
  func.func @transform_2(%arg0: i32) -> (i32, i32) {
    %c0_i32 = arith.constant 0 : i32
    %c0_i32_0 = arith.constant 0 : i32
    %c0_i32_1 = arith.constant 0 : i32
    return %c0_i32, %c0_i32_0 : i32, i32
  }
  func.func @transform_3(%arg0: i32) -> (i32, i32) {
    %c0_i32 = arith.constant 0 : i32
    %c0_i32_0 = arith.constant 0 : i32
    %c0_i32_1 = arith.constant 0 : i32
    return %c0_i32, %c0_i32_0 : i32, i32
  }
  func.func @transform_4(%arg0: i32) -> (i32, i32) {
    %c0_i32 = arith.constant 0 : i32
    %c0_i32_0 = arith.constant 0 : i32
    %c0_i32_1 = arith.constant 0 : i32
    return %c0_i32, %c0_i32_0 : i32, i32
  }
  func.func @transform_5(%arg0: i32) -> (i32, i32) {
    %c0_i32 = arith.constant 0 : i32
    %c0_i32_0 = arith.constant 0 : i32
    %c0_i32_1 = arith.constant 0 : i32
    return %c0_i32, %c0_i32_0 : i32, i32
  }
  func.func @transform_6(%arg0: i32) -> (i32, i32) {
    %c0_i32 = arith.constant 0 : i32
    %c0_i32_0 = arith.constant 0 : i32
    %c0_i32_1 = arith.constant 0 : i32
    return %c0_i32, %c0_i32_0 : i32, i32
  }
  func.func @transform_7(%arg0: i32) -> (i32, i32) {
    %c0_i32 = arith.constant 0 : i32
    %c0_i32_0 = arith.constant 0 : i32
    %c0_i32_1 = arith.constant 0 : i32
    return %c0_i32, %c0_i32_0 : i32, i32
  }
  func.func @transform_8(%arg0: i32) -> (i32, i32) {
    %c0_i32 = arith.constant 0 : i32
    %c0_i32_0 = arith.constant 0 : i32
    %c0_i32_1 = arith.constant 0 : i32
    return %c0_i32, %c0_i32_0 : i32, i32
  }
  func.func @transform_9(%arg0: i32) -> (i32, i32) {
    %c0_i32 = arith.constant 0 : i32
    %c0_i32_0 = arith.constant 0 : i32
    %c0_i32_1 = arith.constant 0 : i32
    return %c0_i32, %c0_i32_0 : i32, i32
  }
  func.func @transform_10(%arg0: i32) -> (i32, i32) {
    %c0_i32 = arith.constant 0 : i32
    %c0_i32_0 = arith.constant 0 : i32
    %c0_i32_1 = arith.constant 0 : i32
    return %c0_i32, %c0_i32_0 : i32, i32
  }
  func.func @transform_11(%arg0: i32) -> (i32, i32) {
    %c0_i32 = arith.constant 0 : i32
    %c0_i32_0 = arith.constant 0 : i32
    %c0_i32_1 = arith.constant 0 : i32
    return %c0_i32, %c0_i32_0 : i32, i32
  }
  func.func @transform_12(%arg0: i32) -> (i32, i32) {
    %c0_i32 = arith.constant 0 : i32
    %c0_i32_0 = arith.constant 0 : i32
    %c0_i32_1 = arith.constant 0 : i32
    return %c0_i32, %c0_i32_0 : i32, i32
  }
  func.func @transform_13(%arg0: i32) -> (i32, i32) {
    %c0_i32 = arith.constant 0 : i32
    %c0_i32_0 = arith.constant 0 : i32
    %c0_i32_1 = arith.constant 0 : i32
    return %c0_i32, %c0_i32_0 : i32, i32
  }
  func.func @transform_14(%arg0: i32) -> (i32, i32) {
    %c0_i32 = arith.constant 0 : i32
    %c0_i32_0 = arith.constant 0 : i32
    return %arg0, %c0_i32 : i32, i32
  }
}

</mosaic_0001>

<bundles_post_ra>
// kernel: tpu_custom_call.1
= control target key start
LH: loop header
LB: loop body
LE: loop exit
PB: predicated region body
PF: predicated region fallthrough
CT: control target
= control target key end

     0   :  { %19 = vsyncpa [#allocation3], 0  ;;  %s2407_s0 = inlined_call_operand.vmem [shape: bf16[64,8], index: 0, kind: input, shape index: {}]   ;;  %s2408_s1 = inlined_call_operand.vmem [shape: bf16[64,32], index: 1, kind: input, shape index: {}]   ;;  %s2409_s2 = inlined_call_operand.hbm [shape: bf16[8,256], index: 2, kind: input, shape index: {}]   ;;  %s2410_s3 = inlined_call_operand.vmem [shape: bf16[32,256], index: 3, kind: input, shape index: {}]   ;;  %s2411_s4 = inlined_call_operand.vmem [shape: f32[1,256], index: 4, kind: input, shape index: {}]   ;;  %s2412_s5 = inlined_call_operand.hbm [shape: bf16[256,256], index: 5, kind: input, shape index: {}]   ;;  %s2413_s6 = inlined_call_operand.vmem [shape: bf16[32,256], index: 6, kind: input, shape index: {}]   ;;  %s2414_s7 = inlined_call_operand.hbm [shape: f32[1,256], index: 7, kind: input, shape index: {}]   ;;  %s2415_s8 = inlined_call_operand.hbm [shape: bf16[256,256], index: 8, kind: input, shape index: {}]   ;;  %s2416_s9 = inlined_call_operand.vmem [shape: bf16[32,256], index: 9, kind: input, shape index: {}]   ;;  %s2417_s10 = inlined_call_operand.vmem [shape: f32[1,256], index: 10, kind: input, shape index: {}]   ;;  %s2418_s11 = inlined_call_operand.hbm [shape: bf16[256,128], index: 11, kind: input, shape index: {}]   ;;  %s2419_s12 = inlined_call_operand.vmem [shape: bf16[32,128], index: 12, kind: input, shape index: {}]   ;;  %s2420_s13 = inlined_call_operand.vmem [shape: f32[1,128], index: 13, kind: input, shape index: {}]   ;;  %s2421_s14 = inlined_call_operand.vmem [shape: f32[64,8], index: 14, kind: output, shape index: {}]  }
   0x1   :  { %20 = vsyncpa [#allocation5], 0 }
   0x2   :  { %21 = vsyncpa [#allocation8], 0  ;;  %s2061_s29 = smov [#allocation4]   ;;  %s1945_s17 = scalar_lea.hbm %s2412_s5, 4096 }
   0x3   :  { %s45_s30 = sshll.u32 %s2061_s29, 4  ;;  %p1946_p0 = scmp.ne.s32.totalorder %s2412_s5, %s1945_s17  ;;  %s46_s30 = int_to_ptr.vmem [resolvable:$true] %s45_s30 }
   0x4   :  { %p1949_p1 = scmp.lt.u32.totalorder %s1945_s17, %s2412_s5 }
   0x6   :  { %p1951_p2 = pnand %p1949_p1, %p1946_p0 }
   0x8   :  { %1954 = shalt.err (!%p1951_p2)
}
   0x9   :  { %s1955_s22 = scalar_lea.vmem %s46_s30, 4096  ;;  %p1960_p4 = scmp.lt.s32.totalorder %s46_s30, %s46_s30 }
   0xa   :  { %p1956_p3 = scmp.ne.s32.totalorder %s46_s30, %s1955_s22  ;;  %p1961_p5 = scmp.lt.s32.totalorder %s1955_s22, %s1955_s22 }
   0xc   :  { %p1962_p6 = por %p1961_p5, %p1960_p4 }
   0xe   :  { %p1963_p7 = pnand %p1962_p6, %p1956_p3 }
  0x10   :  { %1966 = shalt.err (!%p1963_p7)
}
  0x11   :  { %s2062_s23 = smov 128   ;;  %s2063_s24 = smov 8  }
  0x12   :  { %51 = dma.hbm_to_vmem [thread:$0]  %s2412_s5, 4096, %s46_s30, [#allocation5], %s2062_s23, %s2062_s23, %s2063_s24  }
  0x13   :  { %s2064_s27 = smov [#allocation7]   ;;  %s2065_s29 = smov [#allocation2]  }
  0x14   :  { %s69_s28 = sshll.u32 %s2064_s27, 4  ;;  %s32_s15 = sshll.u32 %s2065_s29, 4  ;;  %s70_s28 = int_to_ptr.vmem [resolvable:$true] %s69_s28  ;;  %s33_s15 = int_to_ptr.vmem [resolvable:$true] %s32_s15 }
  0x15   :  { %s1967_s18 = scalar_lea.hbm %s2415_s8, 4096 }
  0x16   :  { %p1968_p8 = scmp.ne.s32.totalorder %s2415_s8, %s1967_s18  ;;  %p1971_p9 = scmp.lt.u32.totalorder %s1967_s18, %s2415_s8 }
  0x18   :  { %p1973_p10 = pnand %p1971_p9, %p1968_p8 }
  0x1a   :  { %1976 = shalt.err (!%p1973_p10)
}
  0x1b   :  { %s1977_s5 = scalar_lea.vmem %s70_s28, 4096  ;;  %p1982_p12 = scmp.lt.s32.totalorder %s70_s28, %s70_s28 }
  0x1c   :  { %p1978_p11 = scmp.ne.s32.totalorder %s70_s28, %s1977_s5  ;;  %p1983_p13 = scmp.lt.s32.totalorder %s1977_s5, %s1977_s5 }
  0x1e   :  { %p1984_p0 = por %p1983_p13, %p1982_p12 }
  0x20   :  { %p1985_p1 = pnand %p1984_p0, %p1978_p11 }
  0x22   :  { %1988 = shalt.err (!%p1985_p1)
}
  0x23   :  { %75 = dma.hbm_to_vmem [thread:$0]  %s2415_s8, 4096, %s70_s28, [#allocation8], %s2062_s23, %s2062_s23, %s2063_s24  }
  0x24   :  { %s1989_s29 = scalar_lea.hbm %s2409_s2, 128 }
  0x25   :  { %p1990_p2 = scmp.ne.s32.totalorder %s2409_s2, %s1989_s29  ;;  %p1993_p3 = scmp.lt.u32.totalorder %s1989_s29, %s2409_s2 }
  0x27   :  { %p1995_p4 = pnand %p1993_p3, %p1990_p2 }
  0x29   :  { %1998 = shalt.err (!%p1995_p4)
}
  0x2a   :  { %s1999_s20 = scalar_lea.vmem %s33_s15, 128  ;;  %p2004_p6 = scmp.lt.s32.totalorder %s33_s15, %s33_s15 }
  0x2b   :  { %p2000_p5 = scmp.ne.s32.totalorder %s33_s15, %s1999_s20  ;;  %p2005_p7 = scmp.lt.s32.totalorder %s1999_s20, %s1999_s20 }
  0x2d   :  { %p2006_p8 = por %p2005_p7, %p2004_p6 }
  0x2f   :  { %p2007_p9 = pnand %p2006_p8, %p2000_p5 }
  0x31   :  { %2010 = shalt.err (!%p2007_p9)
}
  0x32   :  { %35 = dma.hbm_to_vmem [thread:$0]  %s2409_s2, 128, %s33_s15, [#allocation3]  }
  0x33   :  { %s2066_s24 = smov [#allocation6]   ;;  %s2067_s21 = smov [#allocation9]  }
  0x34   :  { %s60_s28 = sshll.u32 %s2066_s24, 4  ;;  %s85_s22 = sshll.u32 %s2067_s21, 4  ;;  %s61_s28 = int_to_ptr.vmem [resolvable:$true] %s60_s28  ;;  %s86_s22 = int_to_ptr.vmem [resolvable:$true] %s85_s22 }
  0x35   :  { %s2011_s25 = scalar_lea.hbm %s2414_s7, 32 }
  0x36   :  { %p2012_p10 = scmp.ne.s32.totalorder %s2414_s7, %s2011_s25  ;;  %p2015_p11 = scmp.lt.u32.totalorder %s2011_s25, %s2414_s7 }
  0x38   :  { %p2017_p12 = pnand %p2015_p11, %p2012_p10 }
  0x3a   :  { %2020 = shalt.err (!%p2017_p12)
}
  0x3b   :  { %s2021_s2 = scalar_lea.vmem %s61_s28, 32  ;;  %p2026_p0 = scmp.lt.s32.totalorder %s61_s28, %s61_s28 }
  0x3c   :  { %p2022_p13 = scmp.ne.s32.totalorder %s61_s28, %s2021_s2  ;;  %p2027_p1 = scmp.lt.s32.totalorder %s2021_s2, %s2021_s2 }
  0x3e   :  { %p2028_p2 = por %p2027_p1, %p2026_p0 }
  0x40   :  { %p2029_p3 = pnand %p2028_p2, %p2022_p13 }
  0x42   :  { %2032 = shalt.err (!%p2029_p3)
}
  0x43   :  { %63 = dma.hbm_to_vmem [thread:$0]  %s2414_s7, 32, %s61_s28, [#allocation5]  }
  0x44   :  { %s2033_s20 = scalar_lea.hbm %s2418_s11, 2048 }
  0x45   :  { %p2034_p4 = scmp.ne.s32.totalorder %s2418_s11, %s2033_s20  ;;  %p2037_p5 = scmp.lt.u32.totalorder %s2033_s20, %s2418_s11 }
  0x47   :  { %p2039_p6 = pnand %p2037_p5, %p2034_p4 }
  0x49   :  { %2042 = shalt.err (!%p2039_p6)
}
  0x4a   :  { %s2043_s5 = scalar_lea.vmem %s86_s22, 2048  ;;  %p2048_p8 = scmp.lt.s32.totalorder %s86_s22, %s86_s22 }
  0x4b   :  { %p2044_p7 = scmp.ne.s32.totalorder %s86_s22, %s2043_s5  ;;  %p2049_p9 = scmp.lt.s32.totalorder %s2043_s5, %s2043_s5 }
  0x4d   :  { %p2050_p10 = por %p2049_p9, %p2048_p8 }
  0x4f   :  { %p2051_p11 = pnand %p2050_p10, %p2044_p7 }
  0x51   :  { %2054 = shalt.err (!%p2051_p11)
}
  0x52   :  { %s2068_s7 = smov 64   ;;  %s2069_s28 = smov 4  }
  0x53   :  { %91 = dma.hbm_to_vmem [thread:$0]  %s2418_s11, 2048, %s86_s22, [#allocation8], %s2068_s7, %s2068_s7, %s2069_s28  }
  0x54   :  { %2055 = dma.done.wait [#allocation3], 128  }
  0x55   :  { %2056 = vsyncadd [#allocation3], 4294967168 }
  0x56   :  { %2057 = dma.done.wait [#allocation5], 4128  }
  0x57   :  { %2058 = vsyncadd [#allocation5], 4294963168 }
  0x58   :  { %2059 = dma.done.wait [#allocation8], 6144  }
  0x59   :  { %2060 = vsyncadd [#allocation8], 4294961152  ;;  %v2070_v0 = vmov 0   ;;  %v1803_v1 = vld [vmem:[%s2410_s3 + $0x4] ss:$8 sps:$4 sm:$0xff]   ;;  %v128_v5 = vld [vmem:[#allocation2] sm:$0xff] }
  0x5a   :  { %218 = vmatprep.mubr.bf16.mxu0 %v2070_v0  ;;  %517 = vmatprep.mubr.bf16.mxu1 %v2070_v0  ;;  %v1805_v2 = vld [vmem:[%s2410_s3] ss:$8 sps:$4 sm:$0xff]   ;;  %v1806_v3 = vld [vmem:[%s2410_s3 + $0x14] ss:$8 sps:$4 sm:$0xff]   ;;  %v1808_v4 = vld [vmem:[%s2410_s3 + $0x10] ss:$8 sps:$4 sm:$0xff]   ;;  %v1578_v6 = vcombine.high %v128_v5, %v128_v5  ;;  %v1577_v7 = vcombine.low %v128_v5, %v128_v5 }
  0x5b   :  { %186 = vmatprep.subr.bf16.mxu0 %v1803_v1  ;;  %vm297_vm0 = vcmask 1043456   ;;  %v2223_v8 = vld [vmem:[%s2408_s1] sm:$0xff]   ;;  %vm173_vm1 = vcmask 261120   ;;  %v1822_v12 = vld [vmem:[%s2413_s6 + $0x14] ss:$8 sps:$4 sm:$0xff]   ;;  %v2240_v13 = vld [vmem:[%s2408_s1 + $0x8] sm:$0xff]  }
  0x5c   :  { %187 = vmatpush1.bf16.msra.mxu0 %v1805_v2  ;;  %v299_v9 = vsel %vm297_vm0, %v1577_v7, 0  ;;  %v1819_v10 = vld [vmem:[%s2413_s6 + $0x4] ss:$8 sps:$4 sm:$0xff]   ;;  %v1821_v11 = vld [vmem:[%s2413_s6] ss:$8 sps:$4 sm:$0xff]   ;;  %v2253_v18 = vld [vmem:[%s2408_s1 + $0x10] sm:$0xff]  }
  0x5d   :  { %188 = vmatprep.subr.bf16.mxu0 %v1806_v3  ;;  %485 = vmatprep.subr.bf16.mxu1 %v1819_v10  ;;  %v1824_v14 = vld [vmem:[%s2413_s6 + $0x10] ss:$8 sps:$4 sm:$0xff]   ;;  %v1827_v15 = vld [vmem:[#allocation4 + $0x4] ss:$8 sps:$4 sm:$0xff]   ;;  %v1830_v17 = vld [vmem:[#allocation4 + $0x14] ss:$8 sps:$4 sm:$0xff]  }
  0x5e   :  { %486 = vmatpush1.bf16.msra.mxu1 %v1821_v11  ;;  %v1825_v16 = vld [vmem:[#allocation4] ss:$8 sps:$4 sm:$0xff]   ;;  %v1828_v19 = vld [vmem:[#allocation4 + $0x10] ss:$8 sps:$4 sm:$0xff]   ;;  %v1833_v20 = vld [vmem:[#allocation4 + $0x24] ss:$8 sps:$4 sm:$0xff]  }
  0x5f   :  { %487 = vmatprep.subr.bf16.mxu1 %v1822_v12  ;;  %v1831_v21 = vld [vmem:[#allocation4 + $0x20] ss:$8 sps:$4 sm:$0xff]   ;;  %v1836_v22 = vld [vmem:[#allocation4 + $0x34] ss:$8 sps:$4 sm:$0xff]   ;;  %v1834_v24 = vld [vmem:[#allocation4 + $0x30] ss:$8 sps:$4 sm:$0xff]  }
  0x60   :  { %189 = vmatpush1.bf16.msra.mxu0 %v1808_v4  ;;  %v2264_v23 = vld [vmem:[%s2408_s1 + $0x18] sm:$0xff]   ;;  %v1842_v27 = vld [vmem:[#allocation4 + $0x54] ss:$8 sps:$4 sm:$0xff]   ;;  %v1815_v28 = vld [vmem:[%s2407_s0] sm:$0xff]   ;;  %vm284_vm2 = vcmask 64512  }
  0x61   :  { %1579 = vmatprep.subr.msk.bf16.mxu0 %vm297_vm0, %v1578_v6  ;;  %v1839_v25 = vld [vmem:[#allocation4 + $0x44] ss:$8 sps:$4 sm:$0xff]   ;;  %v1837_v26 = vld [vmem:[#allocation4 + $0x40] ss:$8 sps:$4 sm:$0xff]   ;;  %v1840_v29 = vld [vmem:[#allocation4 + $0x50] ss:$8 sps:$4 sm:$0xff]  }
  0x62   :  { %488 = vmatpush1.bf16.msra.mxu1 %v1824_v14  ;;  %v1845_v30 = vld [vmem:[#allocation4 + $0x64] ss:$8 sps:$4 sm:$0xff]   ;;  %v1843_v31 = vld [vmem:[#allocation4 + $0x60] ss:$8 sps:$4 sm:$0xff]   ;;  %v1848_v32 = vld [vmem:[#allocation4 + $0x74] ss:$8 sps:$4 sm:$0xff]  }
  0x63   :  { %1569 = vmatmul.mubr.msk.bf16.vlgmr.msra.gmra.mrb[0].mxu0 %vm173_vm1, %v2223_v8  ;;  %718 = vmatprep.subr.bf16.mxu1 %v1827_v15  ;;  %v1816_v33 = vld [vmem:[%s2407_s0 + $0x8] sm:$0xff]   ;;  %v1851_v35 = vld [vmem:[#allocation4 + $0x84] ss:$8 sps:$4 sm:$0xff]   ;;  %v1849_v36 = vld [vmem:[#allocation4 + $0x80] ss:$8 sps:$4 sm:$0xff]  }
  0x64   :  { %305 = vmatpush1.bf16.msra.mxu0 %v299_v9  ;;  %228 = vmatprep.mubr.bf16.mxu0 %v2070_v0  ;;  %v1846_v34 = vld [vmem:[#allocation4 + $0x70] ss:$8 sps:$4 sm:$0xff]   ;;  %v1854_v37 = vld [vmem:[#allocation4 + $0x94] ss:$8 sps:$4 sm:$0xff]   ;;  %v1857_v40 = vld [vmem:[#allocation4 + $0xa4] ss:$8 sps:$4 sm:$0xff]  }
  0x65   :  { %1588 = vmatmul.mubr.msk.bf16.vlgmr.msra.gmra.mrb[0].mxu1 %vm173_vm1, %v2223_v8  ;;  %v1817_v38 = vld [vmem:[%s2407_s0 + $0x10] sm:$0xff]   ;;  %v1855_v41 = vld [vmem:[#allocation4 + $0xa0] ss:$8 sps:$4 sm:$0xff]   ;;  %v1863_v45 = vld [vmem:[#allocation4 + $0xc4] ss:$8 sps:$4 sm:$0xff]  }
  0x66   :  { %719 = vmatpush1.bf16.msra.mxu1 %v1825_v16  ;;  %527 = vmatprep.mubr.bf16.mxu1 %v2070_v0  ;;  %v1852_v39 = vld [vmem:[#allocation4 + $0x90] ss:$8 sps:$4 sm:$0xff]   ;;  %v1860_v42 = vld [vmem:[#allocation4 + $0xb4] ss:$8 sps:$4 sm:$0xff]   ;;  %v1818_v43 = vld [vmem:[%s2407_s0 + $0x18] sm:$0xff]  }
  0x67   :  { %720 = vmatprep.subr.bf16.mxu1 %v1830_v17  ;;  %v1858_v44 = vld [vmem:[#allocation4 + $0xb0] ss:$8 sps:$4 sm:$0xff]   ;;  %v1861_v46 = vld [vmem:[#allocation4 + $0xc0] ss:$8 sps:$4 sm:$0xff]   ;;  %v1866_v47 = vld [vmem:[#allocation4 + $0xd4] ss:$8 sps:$4 sm:$0xff]  }
  0x68   :  { %v1864_v48 = vld [vmem:[#allocation4 + $0xd0] ss:$8 sps:$4 sm:$0xff]   ;;  %v1869_v49 = vld [vmem:[#allocation4 + $0xe4] ss:$8 sps:$4 sm:$0xff]   ;;  %v1867_v50 = vld [vmem:[#allocation4 + $0xe0] ss:$8 sps:$4 sm:$0xff]  }
  0x69   :  { %v1872_v51 = vld [vmem:[#allocation4 + $0xf4] ss:$8 sps:$4 sm:$0xff]   ;;  %v1870_v52 = vld [vmem:[#allocation4 + $0xf0] ss:$8 sps:$4 sm:$0xff]   ;;  %v1879_v58 = vld [vmem:[#allocation7] ss:$8 sps:$4 sm:$0xff]  }
  0x6a   :  { %721 = vmatpush1.bf16.msra.mxu1 %v1828_v19  ;;  %v1873_v53 = vld [vmem:[%s2416_s9] ss:$8 sps:$4 sm:$0xff]   ;;  %v1875_v54 = vld [vmem:[%s2416_s9 + $0x4] ss:$8 sps:$4 sm:$0xff]   ;;  %v1878_v55 = vld [vmem:[%s2416_s9 + $0x14] ss:$8 sps:$4 sm:$0xff]  }
  0x6b   :  { %1570 = vmatmul.mubr.msk.bf16.gmra.mrb[4].mxu0 %vm173_vm1, %v2240_v13  ;;  %722 = vmatprep.subr.bf16.mxu1 %v1833_v20  ;;  %v1876_v56 = vld [vmem:[%s2416_s9 + $0x10] ss:$8 sps:$4 sm:$0xff]   ;;  %v1881_v57 = vld [vmem:[#allocation7 + $0x4] ss:$8 sps:$4 sm:$0xff]  }
  0x6c   :  { %238 = vmatprep.mubr.bf16.mxu0 %v2070_v0  ;;  %899 = vmatprep.subr.bf16.mxu0 %v1875_v54  ;;  %v1884_v59 = vld [vmem:[#allocation7 + $0x14] ss:$8 sps:$4 sm:$0xff]   ;;  %v1882_v60 = vld [vmem:[#allocation7 + $0x10] ss:$8 sps:$4 sm:$0xff]   ;;  %v1887_v61 = vld [vmem:[#allocation7 + $0x24] ss:$8 sps:$4 sm:$0xff]  }
  0x6d   :  { %1589 = vmatmul.mubr.msk.bf16.gmra.mrb[4].mxu1 %vm173_vm1, %v2240_v13  ;;  %v1885_v62 = vld [vmem:[#allocation7 + $0x20] ss:$8 sps:$4 sm:$0xff]   ;;  %v1890_v63 = vld [vmem:[#allocation7 + $0x34] ss:$8 sps:$4 sm:$0xff]   ;;  %v1888_v1 = vld [vmem:[#allocation7 + $0x30] ss:$8 sps:$4 sm:$0xff]  }
  0x6e   :  { %723 = vmatpush1.bf16.msra.mxu1 %v1831_v21  ;;  %537 = vmatprep.mubr.bf16.mxu1 %v2070_v0  ;;  %v1893_v2 = vld [vmem:[#allocation7 + $0x44] ss:$8 sps:$4 sm:$0xff]   ;;  %v1891_v3 = vld [vmem:[#allocation7 + $0x40] ss:$8 sps:$4 sm:$0xff]   ;;  %v1896_v4 = vld [vmem:[#allocation7 + $0x54] ss:$8 sps:$4 sm:$0xff]  }
  0x6f   :  { %724 = vmatprep.subr.bf16.mxu1 %v1836_v22  ;;  %v1894_v5 = vld [vmem:[#allocation7 + $0x50] ss:$8 sps:$4 sm:$0xff]   ;;  %v1899_v6 = vld [vmem:[#allocation7 + $0x64] ss:$8 sps:$4 sm:$0xff]   ;;  %v1897_v7 = vld [vmem:[#allocation7 + $0x60] ss:$8 sps:$4 sm:$0xff]  }
  0x70   :  { %v1902_v9 = vld [vmem:[#allocation7 + $0x74] ss:$8 sps:$4 sm:$0xff]   ;;  %v1900_v10 = vld [vmem:[#allocation7 + $0x70] ss:$8 sps:$4 sm:$0xff]   ;;  %v1905_v11 = vld [vmem:[#allocation7 + $0x84] ss:$8 sps:$4 sm:$0xff]  }
  0x71   :  { %v1903_v12 = vld [vmem:[#allocation7 + $0x80] ss:$8 sps:$4 sm:$0xff]   ;;  %v1908_v14 = vld [vmem:[#allocation7 + $0x94] ss:$8 sps:$4 sm:$0xff]   ;;  %v1906_v15 = vld [vmem:[#allocation7 + $0x90] ss:$8 sps:$4 sm:$0xff]  }
  0x72   :  { %725 = vmatpush1.bf16.msra.mxu1 %v1834_v24  ;;  %v1909_v16 = vld [vmem:[#allocation7 + $0xa0] ss:$8 sps:$4 sm:$0xff]   ;;  %v1914_v17 = vld [vmem:[#allocation7 + $0xb4] ss:$8 sps:$4 sm:$0xff]   ;;  %v1912_v19 = vld [vmem:[#allocation7 + $0xb0] ss:$8 sps:$4 sm:$0xff]  }
  0x73   :  { %1571 = vmatmul.mubr.msk.bf16.gmra.mrb[8].mxu0 %vm173_vm1, %v2253_v18  ;;  %726 = vmatprep.subr.bf16.mxu1 %v1839_v25  ;;  %v1917_v20 = vld [vmem:[#allocation7 + $0xc4] ss:$8 sps:$4 sm:$0xff]   ;;  %v1915_v21 = vld [vmem:[#allocation7 + $0xc0] ss:$8 sps:$4 sm:$0xff]   ;;  %v1920_v22 = vld [vmem:[#allocation7 + $0xd4] ss:$8 sps:$4 sm:$0xff]   ;;  %v379_v25 = vlaneseq }
  0x74   :  { %248 = vmatprep.mubr.bf16.mxu0 %v2070_v0  ;;  %v1918_v24 = vld [vmem:[#allocation7 + $0xd0] ss:$8 sps:$4 sm:$0xff]  }
  0x75   :  { %1590 = vmatmul.mubr.msk.bf16.gmra.mrb[8].mxu1 %vm173_vm1, %v2253_v18 }
  0x76   :  { %727 = vmatpush1.bf16.msra.mxu1 %v1837_v26  ;;  %547 = vmatprep.mubr.bf16.mxu1 %v2070_v0  ;;  %v380_v26 = vshrl.u32 %v379_v25, 7 }
  0x77   :  { %728 = vmatprep.subr.bf16.mxu1 %v1842_v27 }
  0x78   :  { %v2318_v27 = vsub.s32 0, %v380_v26 }
  0x7a   :  { %729 = vmatpush1.bf16.msra.mxu1 %v1840_v29  ;;  %v2323_v29 = vsub.s32 1, %v380_v26 }
  0x7b   :  { %1572 = vmatmul.mubr.msk.bf16.gmra.mrb[12].mxu0 %vm173_vm1, %v2264_v23  ;;  %730 = vmatprep.subr.bf16.mxu1 %v1845_v30 }
  0x7c   :  { %336 = vmatprep.mubr.bf16.mxu0 %v2070_v0 }
  0x7d   :  { %1591 = vmatmul.mubr.msk.bf16.gmra.mrb[12].mxu1 %vm173_vm1, %v2264_v23 }
  0x7e   :  { %731 = vmatpush1.bf16.msra.mxu1 %v1843_v31 }
  0x7f   :  { %732 = vmatprep.subr.bf16.mxu1 %v1848_v32 }
  0x82   :  { %733 = vmatpush1.bf16.msra.mxu1 %v1846_v34 }
  0x83   :  { %1580 = vmatmul.mubr.msk.bf16.vlgmr.msra.gmra.mrb[0].mxu0 %vm284_vm2, %v1815_v28  ;;  %734 = vmatprep.subr.bf16.mxu1 %v1851_v35  ;;  %v377_v28 = vld [vmem:[%s2411_s4] sm:$0x3] }
  0x84   :  { %346 = vmatprep.mubr.bf16.mxu0 %v2070_v0  ;;  %900 = vmatpush1.bf16.msra.mxu0 %v1873_v53  ;;  %v382_v30 = vrot.slane %v377_v28, %v2318_v27  ;;  %v386_v31 = vrot.slane %v377_v28, %v2323_v29 }
  0x85   :  { %901 = vmatprep.subr.bf16.mxu0 %v1878_v55 }
  0x86   :  { %735 = vmatpush1.bf16.msra.mxu1 %v1849_v36 }
  0x87   :  { %736 = vmatprep.subr.bf16.mxu1 %v1854_v37 }
  0x88   :  { %902 = vmatpush1.bf16.msra.mxu0 %v1876_v56 }
  0x89   :  { %1132 = vmatprep.subr.bf16.mxu0 %v1881_v57 }
  0x8a   :  { %737 = vmatpush1.bf16.msra.mxu1 %v1852_v39 }
  0x8b   :  { %1581 = vmatmul.mubr.msk.bf16.gmra.mrb[4].mxu0 %vm284_vm2, %v1816_v33  ;;  %738 = vmatprep.subr.bf16.mxu1 %v1857_v40 }
  0x8c   :  { %356 = vmatprep.mubr.bf16.mxu0 %v2070_v0 }
  0x8e   :  { %739 = vmatpush1.bf16.msra.mxu1 %v1855_v41 }
  0x8f   :  { %740 = vmatprep.subr.bf16.mxu1 %v1860_v42 }
  0x92   :  { %741 = vmatpush1.bf16.msra.mxu1 %v1858_v44 }
  0x93   :  { %1582 = vmatmul.mubr.msk.bf16.gmra.mrb[8].mxu0 %vm284_vm2, %v1817_v38  ;;  %742 = vmatprep.subr.bf16.mxu1 %v1863_v45 }
  0x94   :  { %366 = vmatprep.mubr.bf16.mxu0 %v2070_v0 }
  0x96   :  { %743 = vmatpush1.bf16.msra.mxu1 %v1861_v46 }
  0x97   :  { %744 = vmatprep.subr.bf16.mxu1 %v1866_v47 }
  0x9a   :  { %745 = vmatpush1.bf16.msra.mxu1 %v1864_v48 }
  0x9b   :  { %1583 = vmatmul.mubr.msk.bf16.gmra.mrb[12].mxu0 %vm284_vm2, %v1818_v43  ;;  %746 = vmatprep.subr.bf16.mxu1 %v1869_v49 }
  0x9c   :  { %931 = vmatprep.mubr.bf16.mxu0 %v2070_v0 }
  0x9e   :  { %747 = vmatpush1.bf16.msra.mxu1 %v1867_v50 }
  0x9f   :  { %748 = vmatprep.subr.bf16.mxu1 %v1872_v51 }
  0xa2   :  { %749 = vmatpush1.bf16.msra.mxu1 %v1870_v52 }
  0xa3   :  { %1628 = vmatmul.mubr.msk.bf16.vlgmr.msra.gmra.mrb[16].mxu0 %vm173_vm1, %v2223_v8 }
  0xa4   :  { %1133 = vmatpush1.bf16.msra.mxu0 %v1879_v58  ;;  %941 = vmatprep.mubr.bf16.mxu0 %v2070_v0 }
  0xa5   :  { %1134 = vmatprep.subr.bf16.mxu0 %v1884_v59 }
  0xa8   :  { %1135 = vmatpush1.bf16.msra.mxu0 %v1882_v60 }
  0xa9   :  { %1136 = vmatprep.subr.bf16.mxu0 %v1887_v61 }
  0xab   :  { %1629 = vmatmul.mubr.msk.bf16.gmra.mrb[20].mxu0 %vm173_vm1, %v2240_v13 }
  0xac   :  { %1137 = vmatpush1.bf16.msra.mxu0 %v1885_v62  ;;  %951 = vmatprep.mubr.bf16.mxu0 %v2070_v0 }
  0xad   :  { %1138 = vmatprep.subr.bf16.mxu0 %v1890_v63 }
  0xb0   :  { %1139 = vmatpush1.bf16.msra.mxu0 %v1888_v1 }
  0xb1   :  { %1140 = vmatprep.subr.bf16.mxu0 %v1893_v2 }
  0xb3   :  { %1630 = vmatmul.mubr.msk.bf16.gmra.mrb[24].mxu0 %vm173_vm1, %v2253_v18 }
  0xb4   :  { %1141 = vmatpush1.bf16.msra.mxu0 %v1891_v3  ;;  %961 = vmatprep.mubr.bf16.mxu0 %v2070_v0  ;;  %v1911_v0 = vld [vmem:[#allocation7 + $0xa4] ss:$8 sps:$4 sm:$0xff]  }
  0xb5   :  { %1142 = vmatprep.subr.bf16.mxu0 %v1896_v4 }
  0xb8   :  { %1143 = vmatpush1.bf16.msra.mxu0 %v1894_v5 }
  0xb9   :  { %1144 = vmatprep.subr.bf16.mxu0 %v1899_v6 }
  0xbb   :  { %1631 = vmatmul.mubr.msk.bf16.gmra.mrb[28].mxu0 %vm173_vm1, %v2264_v23 }
  0xbc   :  { %1145 = vmatpush1.bf16.msra.mxu0 %v1897_v7 }
  0xbd   :  { %1146 = vmatprep.subr.bf16.mxu0 %v1902_v9 }
  0xc0   :  { %1147 = vmatpush1.bf16.msra.mxu0 %v1900_v10 }
  0xc1   :  { %1148 = vmatprep.subr.bf16.mxu0 %v1905_v11 }
  0xc4   :  { %1149 = vmatpush1.bf16.msra.mxu0 %v1903_v12 }
  0xc5   :  { %1150 = vmatprep.subr.bf16.mxu0 %v1908_v14 }
  0xc8   :  { %1151 = vmatpush1.bf16.msra.mxu0 %v1906_v15 }
  0xc9   :  { %1152 = vmatprep.subr.bf16.mxu0 %v1911_v0 }
  0xcc   :  { %1153 = vmatpush1.bf16.msra.mxu0 %v1909_v16 }
  0xcd   :  { %1154 = vmatprep.subr.bf16.mxu0 %v1914_v17 }
  0xd0   :  { %1155 = vmatpush1.bf16.msra.mxu0 %v1912_v19 }
  0xd1   :  { %1156 = vmatprep.subr.bf16.mxu0 %v1917_v20 }
  0xd4   :  { %1157 = vmatpush1.bf16.msra.mxu0 %v1915_v21 }
  0xd5   :  { %1158 = vmatprep.subr.bf16.mxu0 %v1920_v22 }
  0xd8   :  { %1159 = vmatpush1.bf16.msra.mxu0 %v1918_v24 }
 0x156   :  { %v338_v32 = vpop.f32.mrb[0].mxu0 }
 0x157   :  { %v389_v33 = vadd.f32 %v382_v30, %v338_v32  ;;  %v340_v34 = vpop.f32.mrb[1].mxu0  ;;  %v1923_v32 = vld [vmem:[#allocation7 + $0xe4] ss:$8 sps:$4 sm:$0xff]  }
 0x158   :  { %v390_v35 = vadd.f32 %v386_v31, %v340_v34  ;;  %v342_v36 = vpop.f32.mrb[2].mxu0  ;;  %1160 = vmatprep.subr.bf16.mxu0 %v1923_v32  ;;  %v1926_v34 = vld [vmem:[#allocation7 + $0xf4] ss:$8 sps:$4 sm:$0xff]  }
 0x159   :  { %v391_v37 = vadd.f32 %v382_v30, %v342_v36  ;;  %v344_v38 = vpop.f32.mrb[3].mxu0  ;;  %v405_v40 = vmax.f32 %v389_v33, 0.0  ;;  %v1921_v33 = vld [vmem:[#allocation7 + $0xe0] ss:$8 sps:$4 sm:$0xff]  }
 0x15a   :  { %v392_v39 = vadd.f32 %v386_v31, %v344_v38  ;;  %v406_v42 = vmax.f32 %v390_v35, 0.0  ;;  %1161 = vmatpush1.bf16.msra.mxu0 %v1921_v33  ;;  %v1928_v35 = vld [vmem:[%s2419_s12 + $0x8] sm:$0xff]   ;;  %v1930_v36 = vld [vmem:[#allocation9] sm:$0xff]  }
 0x15b   :  { %v407_v41 = vmax.f32 %v391_v37, 0.0  ;;  %1162 = vmatprep.subr.bf16.mxu0 %v1926_v34  ;;  %v1931_v37 = vld [vmem:[#allocation9 + $0x48] sm:$0xff]  }
 0x15c   :  { %v408_v43 = vmax.f32 %v392_v39, 0.0  ;;  %v1932_v38 = vld [vmem:[#allocation9 + $0x8] sm:$0xff]   ;;  %v1933_v39 = vld [vmem:[#allocation9 + $0x50] sm:$0xff]  }
 0x15d   :  { %v421_v44 = vpack.c.bf16 %v407_v41, %v405_v40  ;;  %v1934_v40 = vld [vmem:[#allocation9 + $0x10] sm:$0xff]   ;;  %v1935_v41 = vld [vmem:[#allocation9 + $0x58] sm:$0xff]  }
 0x15e   :  { %v422_v45 = vpack.c.bf16 %v408_v43, %v406_v42  ;;  %v348_v46 = vpop.f32.mrb[4].mxu0  ;;  %v1936_v42 = vld [vmem:[#allocation9 + $0x18] sm:$0xff]   ;;  %v1937_v43 = vld [vmem:[#allocation9 + $0x60] sm:$0xff]  }
 0x15f   :  { %v393_v47 = vadd.f32 %v382_v30, %v348_v46  ;;  %v350_v48 = vpop.f32.mrb[5].mxu0 }
 0x160   :  { %v394_v49 = vadd.f32 %v386_v31, %v350_v48  ;;  %v352_v50 = vpop.f32.mrb[6].mxu0  ;;  %750 = vmatprep.mubr.bf16.mxu1 %v422_v45 }
 0x161   :  { %v395_v51 = vadd.f32 %v382_v30, %v352_v50  ;;  %v354_v52 = vpop.f32.mrb[7].mxu0  ;;  %751 = vmatmul.mubr.bf16.vlgmr.msra.gmra.mrb[0].mxu1 %v421_v44  ;;  %v409_v54 = vmax.f32 %v393_v47, 0.0  ;;  %v1939_v44 = vld [vmem:[#allocation9 + $0x68] sm:$0xff]  }
 0x162   :  { %v396_v53 = vadd.f32 %v386_v31, %v354_v52  ;;  %v410_v56 = vmax.f32 %v394_v49, 0.0 }
 0x163   :  { %v411_v55 = vmax.f32 %v395_v51, 0.0 }
 0x164   :  { %v412_v57 = vmax.f32 %v396_v53, 0.0 }
 0x165   :  { %v423_v58 = vpack.c.bf16 %v411_v55, %v409_v54 }
 0x166   :  { %v424_v59 = vpack.c.bf16 %v412_v57, %v410_v56  ;;  %v358_v60 = vpop.f32.mrb[8].mxu0 }
 0x167   :  { %v397_v61 = vadd.f32 %v382_v30, %v358_v60  ;;  %v360_v62 = vpop.f32.mrb[9].mxu0 }
 0x168   :  { %v398_v63 = vadd.f32 %v386_v31, %v360_v62  ;;  %v362_v1 = vpop.f32.mrb[10].mxu0  ;;  %760 = vmatprep.mubr.bf16.mxu1 %v424_v59 }
 0x169   :  { %v399_v2 = vadd.f32 %v382_v30, %v362_v1  ;;  %v364_v3 = vpop.f32.mrb[11].mxu0  ;;  %761 = vmatmul.mubr.bf16.gmra.mrb[4].mxu1 %v423_v58  ;;  %v413_v5 = vmax.f32 %v397_v61, 0.0 }
 0x16a   :  { %v400_v4 = vadd.f32 %v386_v31, %v364_v3  ;;  %v414_v7 = vmax.f32 %v398_v63, 0.0 }
 0x16b   :  { %v415_v6 = vmax.f32 %v399_v2, 0.0 }
 0x16c   :  { %v416_v9 = vmax.f32 %v400_v4, 0.0 }
 0x16d   :  { %v425_v10 = vpack.c.bf16 %v415_v6, %v413_v5 }
 0x16e   :  { %v426_v11 = vpack.c.bf16 %v416_v9, %v414_v7  ;;  %v368_v12 = vpop.f32.mrb[12].mxu0 }
 0x16f   :  { %v401_v14 = vadd.f32 %v382_v30, %v368_v12  ;;  %v370_v15 = vpop.f32.mrb[13].mxu0 }
 0x170   :  { %v402_v0 = vadd.f32 %v386_v31, %v370_v15  ;;  %v372_v16 = vpop.f32.mrb[14].mxu0  ;;  %770 = vmatprep.mubr.bf16.mxu1 %v426_v11 }
 0x171   :  { %v403_v17 = vadd.f32 %v382_v30, %v372_v16  ;;  %v374_v19 = vpop.f32.mrb[15].mxu0  ;;  %771 = vmatmul.mubr.bf16.gmra.mrb[8].mxu1 %v425_v10  ;;  %v417_v21 = vmax.f32 %v401_v14, 0.0  ;;  %v1924_v30 = vld [vmem:[#allocation7 + $0xf0] ss:$8 sps:$4 sm:$0xff]  }
 0x172   :  { %v404_v20 = vadd.f32 %v386_v31, %v374_v19  ;;  %v418_v24 = vmax.f32 %v402_v0, 0.0  ;;  %1163 = vmatpush1.bf16.msra.mxu0 %v1924_v30  ;;  %v1927_v31 = vld [vmem:[%s2419_s12] sm:$0xff]  }
 0x173   :  { %v419_v22 = vmax.f32 %v403_v17, 0.0  ;;  %1733 = vmatprep.subr.bf16.mxu1 %v1927_v31 }
 0x174   :  { %v420_v25 = vmax.f32 %v404_v20, 0.0  ;;  %1734 = vmatpush3.bf16.msra.mxu1 %v1927_v31 }
 0x175   :  { %v427_v26 = vpack.c.bf16 %v419_v22, %v417_v21  ;;  %1735 = vmatprep.subr.bf16.mxu1 %v1928_v35 }
 0x176   :  { %v428_v28 = vpack.c.bf16 %v420_v25, %v418_v24 }
 0x178   :  { %780 = vmatprep.mubr.bf16.mxu1 %v428_v28  ;;  %1736 = vmatpush3.bf16.msra.mxu1 %v1928_v35 }
 0x179   :  { %781 = vmatmul.mubr.bf16.gmra.mrb[12].mxu1 %v427_v26 }
 0x17a   :  { %1737 = vmatprep.mubr.msk.bf16.mxu1 %vm173_vm1, %v2223_v8  ;;  %v1929_v8 = vld [vmem:[#allocation9 + $0x40] sm:$0xff]  }
 0x17b   :  { %1693 = vmatprep.subr.bf16.mxu1 %v1929_v8 }
 0x181   :  { %1738 = vmatmul.mubr.msk.bf16.vlgmr.msra.gmra.mrb[16].mxu1 %vm173_vm1, %v2240_v13  ;;  %v1938_v13 = vld [vmem:[#allocation9 + $0x20] sm:$0xff]  }
 0x182   :  { %1694 = vmatpush3.bf16.msra.mxu1 %v1930_v36  ;;  %1741 = vmatprep.mubr.msk.bf16.mxu1 %vm173_vm1, %v2253_v18  ;;  %v791_v18 = vld [vmem:[#allocation6] sm:$0x3] }
 0x183   :  { %1695 = vmatprep.subr.bf16.mxu1 %v1931_v37  ;;  %v796_v45 = vrot.slane %v791_v18, %v2318_v27  ;;  %v800_v46 = vrot.slane %v791_v18, %v2323_v29  ;;  %v1943_v18 = vld [vmem:[#allocation9 + $0x78] sm:$0xff]  }
 0x186   :  { %1696 = vmatpush3.bf16.msra.mxu1 %v1932_v38 }
 0x187   :  { %1697 = vmatprep.subr.bf16.mxu1 %v1933_v39 }
 0x189   :  { %1742 = vmatmul.mubr.msk.bf16.gmra.mrb[20].mxu1 %vm173_vm1, %v2264_v23 }
 0x18a   :  { %1698 = vmatpush3.bf16.msra.mxu1 %v1934_v40 }
 0x18b   :  { %1699 = vmatprep.subr.bf16.mxu1 %v1935_v41 }
 0x18e   :  { %1700 = vmatpush3.bf16.msra.mxu1 %v1936_v42 }
 0x18f   :  { %1701 = vmatprep.subr.bf16.mxu1 %v1937_v43  ;;  %v1940_v43 = vld [vmem:[#allocation9 + $0x28] sm:$0xff]  }
 0x192   :  { %1702 = vmatpush3.bf16.msra.mxu1 %v1938_v13  ;;  %v1941_v13 = vld [vmem:[#allocation9 + $0x70] sm:$0xff]  }
 0x193   :  { %1703 = vmatprep.subr.bf16.mxu1 %v1939_v44  ;;  %v1942_v44 = vld [vmem:[#allocation9 + $0x30] sm:$0xff]  }
 0x196   :  { %1704 = vmatpush3.bf16.msra.mxu1 %v1940_v43 }
 0x197   :  { %1705 = vmatprep.subr.bf16.mxu1 %v1941_v13 }
 0x19a   :  { %1706 = vmatpush3.bf16.msra.mxu1 %v1942_v44 }
 0x19b   :  { %1707 = vmatprep.subr.bf16.mxu1 %v1943_v18 }
 0x234   :  { %v752_v47 = vpop.f32.mrb[0].mxu1 }
 0x235   :  { %v803_v48 = vadd.f32 %v796_v45, %v752_v47  ;;  %v754_v49 = vpop.f32.mrb[1].mxu1  ;;  %v1944_v47 = vld [vmem:[#allocation9 + $0x38] sm:$0xff]  }
 0x236   :  { %v804_v50 = vadd.f32 %v800_v46, %v754_v49  ;;  %v756_v23 = vpop.f32.mrb[2].mxu1  ;;  %1708 = vmatpush3.bf16.msra.mxu1 %v1944_v47 }
 0x237   :  { %v805_v51 = vadd.f32 %v796_v45, %v756_v23  ;;  %v758_v52 = vpop.f32.mrb[3].mxu1  ;;  %v819_v54 = vmax.f32 %v803_v48, 0.0 }
 0x238   :  { %v806_v53 = vadd.f32 %v800_v46, %v758_v52  ;;  %v820_v56 = vmax.f32 %v804_v50, 0.0 }
 0x239   :  { %v821_v55 = vmax.f32 %v805_v51, 0.0 }
 0x23a   :  { %v822_v57 = vmax.f32 %v806_v53, 0.0  ;;  %v1205_v53 = vld [vmem:[%s2417_s10] sm:$0x3] }
 0x23b   :  { %v835_v58 = vpack.c.bf16 %v821_v55, %v819_v54  ;;  %v1210_v54 = vrot.slane %v1205_v53, %v2318_v27  ;;  %v1214_v55 = vrot.slane %v1205_v53, %v2323_v29 }
 0x23c   :  { %v836_v59 = vpack.c.bf16 %v822_v57, %v820_v56  ;;  %v762_v60 = vpop.f32.mrb[4].mxu1 }
 0x23d   :  { %v807_v61 = vadd.f32 %v796_v45, %v762_v60  ;;  %v764_v62 = vpop.f32.mrb[5].mxu1 }
 0x23e   :  { %v808_v63 = vadd.f32 %v800_v46, %v764_v62  ;;  %v766_v1 = vpop.f32.mrb[6].mxu1  ;;  %1164 = vmatprep.mubr.bf16.mxu0 %v836_v59 }
 0x23f   :  { %v809_v2 = vadd.f32 %v796_v45, %v766_v1  ;;  %v768_v3 = vpop.f32.mrb[7].mxu1  ;;  %1165 = vmatmul.mubr.bf16.vlgmr.msra.gmra.mrb[16].mxu0 %v835_v58  ;;  %v823_v5 = vmax.f32 %v807_v61, 0.0 }
 0x240   :  { %v810_v4 = vadd.f32 %v800_v46, %v768_v3  ;;  %v824_v7 = vmax.f32 %v808_v63, 0.0 }
 0x241   :  { %v825_v6 = vmax.f32 %v809_v2, 0.0 }
 0x242   :  { %v826_v9 = vmax.f32 %v810_v4, 0.0 }
 0x243   :  { %v837_v10 = vpack.c.bf16 %v825_v6, %v823_v5 }
 0x244   :  { %v838_v11 = vpack.c.bf16 %v826_v9, %v824_v7  ;;  %v772_v12 = vpop.f32.mrb[8].mxu1 }
 0x245   :  { %v811_v14 = vadd.f32 %v796_v45, %v772_v12  ;;  %v774_v15 = vpop.f32.mrb[9].mxu1 }
 0x246   :  { %v812_v0 = vadd.f32 %v800_v46, %v774_v15  ;;  %v776_v16 = vpop.f32.mrb[10].mxu1  ;;  %1174 = vmatprep.mubr.bf16.mxu0 %v838_v11 }
 0x247   :  { %v813_v17 = vadd.f32 %v796_v45, %v776_v16  ;;  %v778_v19 = vpop.f32.mrb[11].mxu1  ;;  %1175 = vmatmul.mubr.bf16.gmra.mrb[20].mxu0 %v837_v10  ;;  %v827_v21 = vmax.f32 %v811_v14, 0.0 }
 0x248   :  { %v814_v20 = vadd.f32 %v800_v46, %v778_v19  ;;  %v828_v24 = vmax.f32 %v812_v0, 0.0 }
 0x249   :  { %v829_v22 = vmax.f32 %v813_v17, 0.0 }
 0x24a   :  { %v830_v25 = vmax.f32 %v814_v20, 0.0 }
 0x24b   :  { %v839_v26 = vpack.c.bf16 %v829_v22, %v827_v21 }
 0x24c   :  { %v840_v28 = vpack.c.bf16 %v830_v25, %v828_v24  ;;  %v782_v32 = vpop.f32.mrb[12].mxu1 }
 0x24d   :  { %v815_v33 = vadd.f32 %v796_v45, %v782_v32  ;;  %v784_v34 = vpop.f32.mrb[13].mxu1 }
 0x24e   :  { %v816_v30 = vadd.f32 %v800_v46, %v784_v34  ;;  %v786_v31 = vpop.f32.mrb[14].mxu1  ;;  %1184 = vmatprep.mubr.bf16.mxu0 %v840_v28 }
 0x24f   :  { %v817_v35 = vadd.f32 %v796_v45, %v786_v31  ;;  %v788_v8 = vpop.f32.mrb[15].mxu1  ;;  %1185 = vmatmul.mubr.bf16.gmra.mrb[24].mxu0 %v839_v26  ;;  %v831_v37 = vmax.f32 %v815_v33, 0.0 }
 0x250   :  { %v818_v36 = vadd.f32 %v800_v46, %v788_v8  ;;  %v832_v39 = vmax.f32 %v816_v30, 0.0 }
 0x251   :  { %v833_v38 = vmax.f32 %v817_v35, 0.0 }
 0x252   :  { %v834_v40 = vmax.f32 %v818_v36, 0.0 }
 0x253   :  { %v841_v41 = vpack.c.bf16 %v833_v38, %v831_v37 }
 0x254   :  { %v842_v42 = vpack.c.bf16 %v834_v40, %v832_v39  ;;  %v2343_v45 = vpop.f32.mrb[16].mxu1 }
 0x255   :  { %v2345_v46 = vpop.f32.mrb[17].mxu1 }
 0x256   :  { %1194 = vmatprep.mubr.bf16.mxu0 %v842_v42  ;;  %v2347_v48 = vpop.f32.mrb[18].mxu1 }
 0x257   :  { %1195 = vmatmul.mubr.bf16.gmra.mrb[28].mxu0 %v841_v41  ;;  %v2349_v49 = vpop.f32.mrb[19].mxu1 }
 0x25c   :  { %v2351_v50 = vpop.f32.mrb[20].mxu1 }
 0x25d   :  { %v2353_v23 = vpop.f32.mrb[21].mxu1 }
 0x25e   :  { %v2355_v51 = vpop.f32.mrb[22].mxu1 }
 0x25f   :  { %v2357_v52 = vpop.f32.mrb[23].mxu1 }
 0x312   :  { %v1166_v56 = vpop.f32.mrb[16].mxu0 }
 0x313   :  { %v1217_v57 = vadd.f32 %v1210_v54, %v1166_v56  ;;  %v1168_v58 = vpop.f32.mrb[17].mxu0 }
 0x314   :  { %v1218_v59 = vadd.f32 %v1214_v55, %v1168_v58  ;;  %v1170_v60 = vpop.f32.mrb[18].mxu0 }
 0x315   :  { %v1219_v61 = vadd.f32 %v1210_v54, %v1170_v60  ;;  %v1172_v62 = vpop.f32.mrb[19].mxu0  ;;  %v1233_v1 = vmax.f32 %v1217_v57, 0.0 }
 0x316   :  { %v1220_v63 = vadd.f32 %v1214_v55, %v1172_v62  ;;  %v1234_v3 = vmax.f32 %v1218_v59, 0.0  ;;  %v1686_v62 = vld [vmem:[%s2420_s13] ss:$0 sm:$0xff] }
 0x317   :  { %v1235_v2 = vmax.f32 %v1219_v61, 0.0 }
 0x318   :  { %v1236_v4 = vmax.f32 %v1220_v63, 0.0 }
 0x319   :  { %v1249_v5 = vpack.c.bf16 %v1235_v2, %v1233_v1 }
 0x31a   :  { %v1250_v6 = vpack.c.bf16 %v1236_v4, %v1234_v3  ;;  %v1176_v7 = vpop.f32.mrb[20].mxu0 }
 0x31b   :  { %v1221_v9 = vadd.f32 %v1210_v54, %v1176_v7  ;;  %v1178_v10 = vpop.f32.mrb[21].mxu0 }
 0x31c   :  { %v1222_v27 = vadd.f32 %v1214_v55, %v1178_v10  ;;  %v1180_v11 = vpop.f32.mrb[22].mxu0  ;;  %1498 = vmatprep.mubr.bf16.mxu1 %v1250_v6 }
 0x31d   :  { %v1223_v29 = vadd.f32 %v1210_v54, %v1180_v11  ;;  %v1182_v12 = vpop.f32.mrb[23].mxu0  ;;  %1499 = vmatmul.mubr.bf16.vlgmr.msra.gmra.mrb[24].mxu1 %v1249_v5  ;;  %v1237_v15 = vmax.f32 %v1221_v9, 0.0 }
 0x31e   :  { %v1224_v14 = vadd.f32 %v1214_v55, %v1182_v12  ;;  %v1238_v16 = vmax.f32 %v1222_v27, 0.0 }
 0x31f   :  { %v1239_v0 = vmax.f32 %v1223_v29, 0.0 }
 0x320   :  { %v1240_v17 = vmax.f32 %v1224_v14, 0.0 }
 0x321   :  { %v1251_v19 = vpack.c.bf16 %v1239_v0, %v1237_v15 }
 0x322   :  { %v1252_v20 = vpack.c.bf16 %v1240_v17, %v1238_v16  ;;  %v1186_v21 = vpop.f32.mrb[24].mxu0 }
 0x323   :  { %v1225_v22 = vadd.f32 %v1210_v54, %v1186_v21  ;;  %v1188_v24 = vpop.f32.mrb[25].mxu0 }
 0x324   :  { %v1226_v25 = vadd.f32 %v1214_v55, %v1188_v24  ;;  %v1190_v26 = vpop.f32.mrb[26].mxu0  ;;  %1506 = vmatprep.mubr.bf16.mxu1 %v1252_v20 }
 0x325   :  { %v1227_v28 = vadd.f32 %v1210_v54, %v1190_v26  ;;  %v1192_v32 = vpop.f32.mrb[27].mxu0  ;;  %1507 = vmatmul.mubr.bf16.gmra.mrb[28].mxu1 %v1251_v19  ;;  %v1241_v34 = vmax.f32 %v1225_v22, 0.0 }
 0x326   :  { %v1228_v33 = vadd.f32 %v1214_v55, %v1192_v32  ;;  %v1242_v31 = vmax.f32 %v1226_v25, 0.0 }
 0x327   :  { %v1243_v30 = vmax.f32 %v1227_v28, 0.0 }
 0x328   :  { %v1244_v35 = vmax.f32 %v1228_v33, 0.0 }
 0x329   :  { %v1253_v8 = vpack.c.bf16 %v1243_v30, %v1241_v34 }
 0x32a   :  { %v1254_v36 = vpack.c.bf16 %v1244_v35, %v1242_v31  ;;  %v1196_v37 = vpop.f32.mrb[28].mxu0 }
 0x32b   :  { %v1229_v38 = vadd.f32 %v1210_v54, %v1196_v37  ;;  %v1198_v39 = vpop.f32.mrb[29].mxu0 }
 0x32c   :  { %v1230_v40 = vadd.f32 %v1214_v55, %v1198_v39  ;;  %v1200_v41 = vpop.f32.mrb[30].mxu0  ;;  %1514 = vmatprep.mubr.bf16.mxu1 %v1254_v36 }
 0x32d   :  { %v1231_v42 = vadd.f32 %v1210_v54, %v1200_v41  ;;  %v1202_v43 = vpop.f32.mrb[31].mxu0  ;;  %1515 = vmatmul.mubr.bf16.gmra.mrb[32].mxu1 %v1253_v8  ;;  %v1245_v44 = vmax.f32 %v1229_v38, 0.0 }
 0x32e   :  { %v1232_v13 = vadd.f32 %v1214_v55, %v1202_v43  ;;  %v1246_v47 = vmax.f32 %v1230_v40, 0.0 }
 0x32f   :  { %v1247_v18 = vmax.f32 %v1231_v42, 0.0 }
 0x330   :  { %v1248_v53 = vmax.f32 %v1232_v13, 0.0 }
 0x331   :  { %v1255_v56 = vpack.c.bf16 %v1247_v18, %v1245_v44 }
 0x332   :  { %v1256_v57 = vpack.c.bf16 %v1248_v53, %v1246_v47 }
 0x334   :  { %1522 = vmatprep.mubr.bf16.mxu1 %v1256_v57 }
 0x335   :  { %1523 = vmatmul.mubr.bf16.gmra.mrb[36].mxu1 %v1255_v56 }
 0x3f0   :  { %v1709_v58 = vpop.f32.mrb[24].mxu1 }
 0x3f1   :  { %v1710_v59 = vpop.f32.mrb[25].mxu1 }
 0x3f2   :  { %v1711_v60 = vadd.f32 %v1710_v59, %v1709_v58  ;;  %v1712_v61 = vpop.f32.mrb[26].mxu1 }
 0x3f3   :  { %v1713_v54 = vpop.f32.mrb[27].mxu1 }
 0x3f4   :  { %v1501_v63 = vadd.f32 %v1711_v60, %v2345_v46  ;;  %v1714_v55 = vadd.f32 %v1713_v54, %v1712_v61 }
 0x3f6   :  { %v1538_v1 = vadd.f32 %v1686_v62, %v1501_v63  ;;  %v1504_v2 = vadd.f32 %v1714_v55, %v2349_v49 }
 0x3f8   :  { %1546 = vst.msk [vmem:[%s2421_s14] sm:$0xff] %vm284_vm2, %v1538_v1  ;;  %v1539_v3 = vadd.f32 %v1686_v62, %v1504_v2  ;;  %v1715_v4 = vpop.f32.mrb[28].mxu1 }
 0x3f9   :  { %v1716_v5 = vpop.f32.mrb[29].mxu1 }
 0x3fa   :  { %1547 = vst.msk [vmem:[%s2421_s14 + $0x8] sm:$0xff] %vm284_vm2, %v1539_v3  ;;  %v1717_v6 = vadd.f32 %v1716_v5, %v1715_v4  ;;  %v1718_v7 = vpop.f32.mrb[30].mxu1 }
 0x3fb   :  { %v1719_v46 = vpop.f32.mrb[31].mxu1 }
 0x3fc   :  { %v1509_v9 = vadd.f32 %v2343_v45, %v1717_v6  ;;  %v1720_v10 = vadd.f32 %v1719_v46, %v1718_v7 }
 0x3fe   :  { %v1540_v49 = vadd.f32 %v1686_v62, %v1509_v9  ;;  %v1512_v27 = vadd.f32 %v2347_v48, %v1720_v10 }
 0x400   :  { %1548 = vst.msk [vmem:[%s2421_s14 + $0x10] sm:$0xff] %vm284_vm2, %v1540_v49  ;;  %v1541_v11 = vadd.f32 %v1686_v62, %v1512_v27  ;;  %v1721_v29 = vpop.f32.mrb[32].mxu1 }
 0x401   :  { %v1722_v12 = vpop.f32.mrb[33].mxu1 }
 0x402   :  { %1549 = vst.msk [vmem:[%s2421_s14 + $0x18] sm:$0xff] %vm284_vm2, %v1541_v11  ;;  %v1723_v14 = vadd.f32 %v1722_v12, %v1721_v29  ;;  %v1724_v15 = vpop.f32.mrb[34].mxu1 }
 0x403   :  { %v1725_v45 = vpop.f32.mrb[35].mxu1 }
 0x404   :  { %v1517_v0 = vadd.f32 %v1723_v14, %v2353_v23  ;;  %v1726_v16 = vadd.f32 %v1725_v45, %v1724_v15 }
 0x406   :  { %v1542_v48 = vadd.f32 %v1686_v62, %v1517_v0  ;;  %v1520_v17 = vadd.f32 %v1726_v16, %v2357_v52 }
 0x408   :  { %1550 = vst.msk [vmem:[%s2421_s14 + $0x20] sm:$0xff] %vm284_vm2, %v1542_v48  ;;  %v1543_v19 = vadd.f32 %v1686_v62, %v1520_v17  ;;  %v1727_v20 = vpop.f32.mrb[36].mxu1 }
 0x409   :  { %v1728_v21 = vpop.f32.mrb[37].mxu1 }
 0x40a   :  { %1551 = vst.msk [vmem:[%s2421_s14 + $0x28] sm:$0xff] %vm284_vm2, %v1543_v19  ;;  %v1729_v22 = vadd.f32 %v1728_v21, %v1727_v20  ;;  %v1730_v24 = vpop.f32.mrb[38].mxu1 }
 0x40b   :  { %v1731_v23 = vpop.f32.mrb[39].mxu1 }
 0x40c   :  { %v1525_v25 = vadd.f32 %v2351_v50, %v1729_v22  ;;  %v1732_v26 = vadd.f32 %v1731_v23, %v1730_v24 }
 0x40e   :  { %v1544_v52 = vadd.f32 %v1686_v62, %v1525_v25  ;;  %v1528_v28 = vadd.f32 %v2355_v51, %v1732_v26 }
 0x410   :  { %1552 = vst.msk [vmem:[%s2421_s14 + $0x30] sm:$0xff] %vm284_vm2, %v1544_v52  ;;  %v1545_v32 = vadd.f32 %v1686_v62, %v1528_v28 }
 0x412   :  { %1553 = vst.msk [vmem:[%s2421_s14 + $0x38] sm:$0xff] %vm284_vm2, %v1545_v32 }
 0x413   :  { %1558 = vsyncpa [#allocation3], 1 }
 0x414   :  { %1559 = vsyncpa [#allocation5], 1 }
 0x415   :  { %1560 = vsyncpa [#allocation8], 1 }

</bundles_post_ra>
